<compile_context>
chip_gen: v5e
topology: v5e:2x2
jax: 0.10.0
libtpu: 0.0.40
codegen_flags: <defaults>
</compile_context>

<pallas_src>
import functools
import math

import jax
import jax.numpy as jnp
from jax import lax
from jax.experimental import pallas as pl
from jax.experimental.pallas import tpu as pltpu

CHUNK_SIZE = 256
EMBEDDING_SIZE = 384


def _self_attention_kernel(x_ref, w_ref, o_ref, *, lane_dense):
    # x_ref: (block_b, T, E) f32 activations (cast to bf16 on the VPU here)
    # w_ref: (E, 3H)         bf16 fused [Wq*E**-0.5 | Wk | Wv]
    # o_ref: (block_b, H, T) if lane_dense else (block_b, T, H), f32
    bblk, t, e = x_ref.shape
    h = w_ref.shape[1] // 3

    # ---- fused QKV projection: one MXU pass with block_b*T rows, 3H cols ----
    x2d = x_ref[...].reshape(bblk * t, e).astype(jnp.bfloat16)
    qkv = jnp.dot(x2d, w_ref[...], preferred_element_type=jnp.float32)
    qkv = qkv.reshape(bblk, t, 3 * h)
    # NOTE: the PyTorch module scales by embedding_size**-0.5 (NOT
    # head_size**-0.5); that scale is already folded into the Wq columns.
    q = qkv[:, :, 0:h].astype(jnp.bfloat16)
    k = qkv[:, :, h:2 * h].astype(jnp.bfloat16)
    v = qkv[:, :, 2 * h:3 * h].astype(jnp.bfloat16)

    # scores: contract the last dims of q and k directly (no k.T transpose).
    s = lax.dot_general(q, k, (((2,), (2,)), ((0,), (0,))),
                        preferred_element_type=jnp.float32)      # (bblk, T, T)

    # causal (tril) mask; a large finite negative avoids any inf-inf NaN
    # hazard and still underflows to exactly 0 after the exp.
    row = lax.broadcasted_iota(jnp.int32, (t, t), 0)
    col = lax.broadcasted_iota(jnp.int32, (t, t), 1)
    s = jnp.where((col <= row)[None, :, :], s, jnp.float32(-1e30))

    # numerically stable softmax; normalization via EUP reciprocal (free slot)
    m = jnp.max(s, axis=-1, keepdims=True)
    p = jnp.exp(s - m)
    denom = jnp.sum(p, axis=-1, keepdims=True)
    weights = (p * pl.reciprocal(denom, approx=True)).astype(jnp.bfloat16)

    # TODO(synk): training-mode dropout (p=0.2) on the attention weights is
    # not implemented (eval-mode identity); it would use pltpu.prng_seed /
    # pltpu.prng_random_bits inside this kernel.

    if lane_dense:
        # Emit the result directly as (bblk, H, T): lane dim = T >= 128, so
        # the stores are full unmasked 128-lane vst (no in-kernel transpose).
        out = lax.dot_general(v, weights, (((1,), (2,)), ((0,), (0,))),
                              preferred_element_type=jnp.float32)
    else:
        out = lax.dot_general(weights, v, (((2,), (1,)), ((0,), (0,))),
                              preferred_element_type=jnp.float32)
    o_ref[...] = out.astype(o_ref.dtype)


def _choose_block_b(batch, seq_len, embed):
    """Batch elements per grid step.

    Targets (a) block_b*T >= 256 rows so the fused QKV projection fills the
    256-row MXU M dimension on v6e/v7x (v5e's 128-row MXU is full earlier),
    and (b) an ~2 MiB f32 x block to amortize the ~0.35us per-grid-step
    overhead, capped so the live f32 (T,T) score/prob temporaries stay small.
    Keeps >= 2 grid steps when the batch allows so both v7x TensorCores get a
    'parallel' step.
    """
    rows = max(1, pl.cdiv(256, seq_len))
    x_mib = max(1, (2 * 1024 * 1024) // (seq_len * embed * 4))
    tmp_cap = max(1, (8 * 1024 * 1024) // (seq_len * seq_len * 8))
    target = min(max(rows, x_mib), tmp_cap)
    divisors = [d for d in range(1, batch + 1) if batch % d == 0]
    cands = [d for d in divisors if d <= target] or [1]
    block_b = cands[-1]
    if batch // block_b < 2:
        smaller = [d for d in cands if batch // d >= 2]
        if smaller:
            block_b = smaller[-1]
    return block_b


def self_attention(x, wq, wk, wv, *, block_b=None):
    """x: (B, T, E) f32; wq/wk/wv: (E, H) f32 (pre-transposed nn.Linear
    weights, y = x @ W). Returns (B, T, H) in x.dtype (eval-mode forward).
    Intended to be called under jit so the weight fusion constant-folds."""
    B, T, E = x.shape
    H = wq.shape[1]
    assert T <= CHUNK_SIZE
    out_dtype = x.dtype

    if block_b is None:
        block_b = _choose_block_b(B, T, E)
    if B % block_b != 0:  # degrade gracefully instead of hard-failing
        block_b = max(d for d in range(1, block_b + 1) if B % d == 0)
    grid = (B // block_b,)
    # TODO(synk): for B=1..2 with very long T on v7x, a second 'parallel'
    # grid axis over query blocks would balance the two TensorCores.

    # Fuse the projection weights into one (E, 3H) bf16 matrix with the
    # module's E**-0.5 scale folded into the Wq columns (one-time, folds
    # under jit). Softmax stays in f32 inside the kernel.
    scale = jnp.float32(E) ** jnp.float32(-0.5)
    w_fused = jnp.concatenate(
        [wq.astype(jnp.float32) * scale, wk, wv], axis=1).astype(jnp.bfloat16)

    lane_dense = T >= 128
    if lane_dense:
        out_shape = jax.ShapeDtypeStruct((B, H, T), out_dtype)
        out_spec = pl.BlockSpec((block_b, H, T), lambda b: (b, 0, 0))
    else:
        out_shape = jax.ShapeDtypeStruct((B, T, H), out_dtype)
        out_spec = pl.BlockSpec((block_b, T, H), lambda b: (b, 0, 0))

    cost = pl.CostEstimate(
        flops=2 * B * T * E * 3 * H + 4 * B * T * T * H,
        transcendentals=B * T * T + B * T,
        bytes_accessed=B * T * E * 4 + E * 3 * H * 2 + B * T * H * 4,
    )

    out = pl.pallas_call(
        functools.partial(_self_attention_kernel, lane_dense=lane_dense),
        out_shape=out_shape,
        grid_spec=pltpu.PrefetchScalarGridSpec(
            num_scalar_prefetch=0,
            grid=grid,
            in_specs=[
                pl.BlockSpec((block_b, T, E), lambda b: (b, 0, 0)),
                # Constant block index across the grid -> the fused weight is
                # fetched once and stays resident in VMEM.
                pl.BlockSpec((E, 3 * H), lambda b: (0, 0)),
            ],
            out_specs=out_spec,
        ),
        compiler_params=pltpu.CompilerParams(
            dimension_semantics=("parallel",),
            vmem_limit_bytes=32 * 1024 * 1024),
        cost_estimate=cost,
    )(x, w_fused)

    if lane_dense:
        out = jnp.swapaxes(out, 1, 2)   # back to (B, T, H)
    return out


def reference(x, wq, wk, wv):
    """Pure-JAX f32 reference mirroring the PyTorch forward (eval mode)."""
    _, T, E = x.shape
    q = x @ wq
    k = x @ wk
    v = x @ wv
    s = (q @ jnp.swapaxes(k, -2, -1)) * (E ** (-0.5))
    mask = jnp.tril(jnp.ones((T, T), dtype=bool))
    s = jnp.where(mask, s, -jnp.inf)
    w = jax.nn.softmax(s, axis=-1)
    return w @ v


if __name__ == "__main__":
    B, T, E, HEAD_SIZE = 2, 8, EMBEDDING_SIZE, 32

    key = jax.random.PRNGKey(0)
    kx, kq, kk, kv, kx2 = jax.random.split(key, 5)

    x = jax.random.normal(kx, (B, T, E), dtype=jnp.float32)
    # nn.Linear(E, H, bias=False) weight is (H, E); y = x @ W.T. We store the
    # transposed weights (E, H) directly.
    bound = 1.0 / math.sqrt(E)
    wq = jax.random.uniform(kq, (E, HEAD_SIZE), jnp.float32, -bound, bound)
    wk = jax.random.uniform(kk, (E, HEAD_SIZE), jnp.float32, -bound, bound)
    wv = jax.random.uniform(kv, (E, HEAD_SIZE), jnp.float32, -bound, bound)

    attn = jax.jit(self_attention)

    # Small toy shape (T < 128 -> plain output layout).
    out = jax.block_until_ready(attn(x, wq, wk, wv))
    ref = reference(x, wq, wk, wv)
    assert out.shape == (B, T, HEAD_SIZE)
    # bf16 MXU operands (x, q, k, v, weights) + approximate EUP reciprocal.
    assert jnp.allclose(out, ref, atol=3e-2, rtol=3e-2), "mismatch (small)"

    # Exercise the lane-dense output path (T >= 128) and batched grid.
    B2, T2 = 4, 128
    x2 = jax.random.normal(kx2, (B2, T2, E), dtype=jnp.float32)
    out2 = jax.block_until_ready(attn(x2, wq, wk, wv))
    ref2 = reference(x2, wq, wk, wv)
    assert out2.shape == (B2, T2, HEAD_SIZE)
    assert jnp.allclose(out2, ref2, atol=3e-2, rtol=3e-2), "mismatch (T=128)"

    print("KERNEL_OK")
</pallas_src>

<mosaic_0001>
module attributes {stable_mosaic.version = 11 : i64} {
  func.func @_self_attention_kernel(%arg0: i32, %arg1: memref<1x8x384xf32, #tpu.memory_space<vmem>>, %arg2: memref<384x96xbf16, #tpu.memory_space<vmem>>, %arg3: memref<1x8x32xf32, #tpu.memory_space<vmem>>) attributes {dimension_semantics = [#tpu.dimension_semantics<parallel>], iteration_bounds = array<i64: 2>, scalar_prefetch = 0 : i64, scratch_operands = 0 : i64, tpu.core_type = #tpu.core_type<tc>, window_params = [{transform_indices = @transform_0, window_bounds = array<i64: 1, 8, 384>}, {pipeline_mode = #tpu.pipeline_mode<synchronous>, transform_indices = @transform_1, window_bounds = array<i64: 384, 96>}, {transform_indices = @transform_2, window_bounds = array<i64: 1, 8, 32>}]} {
    %c0 = arith.constant 0 : index
    %c0_0 = arith.constant 0 : index
    %c0_1 = arith.constant 0 : index
    %0 = vector.load %arg1[%c0, %c0_0, %c0_1] : memref<1x8x384xf32, #tpu.memory_space<vmem>>, vector<1x8x384xf32>
    %1 = vector.shape_cast %0 : vector<1x8x384xf32> to vector<8x384xf32>
    %2 = arith.truncf %1 : vector<8x384xf32> to vector<8x384xbf16>
    %c0_2 = arith.constant 0 : index
    %c0_3 = arith.constant 0 : index
    %3 = vector.load %arg2[%c0_2, %c0_3] : memref<384x96xbf16, #tpu.memory_space<vmem>>, vector<384x96xbf16>
    %cst = arith.constant dense<0.000000e+00> : vector<8x96xf32>
    %4 = tpu.matmul %2, %3, %cst {dimension_numbers = #tpu.dot_dimension_numbers<[1], [0], [0], [1], [0, 0, 1, 1], [], []>} : vector<8x384xbf16>, vector<384x96xbf16>, vector<8x96xf32> -> vector<8x96xf32>
    %5 = vector.shape_cast %4 : vector<8x96xf32> to vector<1x8x96xf32>
    %6 = vector.extract_strided_slice %5 {offsets = [0, 0, 0], sizes = [1, 8, 32], strides = [1, 1, 1]} : vector<1x8x96xf32> to vector<1x8x32xf32>
    %7 = arith.truncf %6 : vector<1x8x32xf32> to vector<1x8x32xbf16>
    %8 = vector.extract_strided_slice %5 {offsets = [0, 0, 32], sizes = [1, 8, 32], strides = [1, 1, 1]} : vector<1x8x96xf32> to vector<1x8x32xf32>
    %9 = arith.truncf %8 : vector<1x8x32xf32> to vector<1x8x32xbf16>
    %10 = vector.extract_strided_slice %5 {offsets = [0, 0, 64], sizes = [1, 8, 32], strides = [1, 1, 1]} : vector<1x8x96xf32> to vector<1x8x32xf32>
    %11 = arith.truncf %10 : vector<1x8x32xf32> to vector<1x8x32xbf16>
    %cst_4 = arith.constant dense<0.000000e+00> : vector<1x8x8xf32>
    %12 = tpu.matmul %7, %9, %cst_4 {dimension_numbers = #tpu.dot_dimension_numbers<[2], [2], [1], [1], [0, 0, 0, 1, 1, 1], [0], [0]>} : vector<1x8x32xbf16>, vector<1x8x32xbf16>, vector<1x8x8xf32> -> vector<1x8x8xf32>
    %13 = tpu.iota {dimensions = array<i32: 0>} : vector<8x8xi32>
    %14 = tpu.iota {dimensions = array<i32: 1>} : vector<8x8xi32>
    %15 = arith.cmpi sle, %14, %13 : vector<8x8xi32>
    %16 = vector.shape_cast %15 : vector<8x8xi1> to vector<1x8x8xi1>
    %cst_5 = arith.constant -1.000000e+30 : f32
    %17 = vector.broadcast %cst_5 : f32 to vector<1x8x8xf32>
    %18 = arith.select %16, %12, %17 : vector<1x8x8xi1>, vector<1x8x8xf32>
    %cst_6 = arith.constant dense<0xFF800000> : vector<1x8xf32>
    %19 = vector.multi_reduction <maximumf>, %18, %cst_6 [2] : vector<1x8x8xf32> to vector<1x8xf32>
    %20 = vector.shape_cast %19 : vector<1x8xf32> to vector<1x8x1xf32>
    %21 = vector.broadcast %20 : vector<1x8x1xf32> to vector<1x8x8xf32>
    %22 = arith.subf %18, %21 : vector<1x8x8xf32>
    %23 = math.exp %22 : vector<1x8x8xf32>
    %cst_7 = arith.constant dense<0.000000e+00> : vector<1x8xf32>
    %24 = vector.multi_reduction <add>, %23, %cst_7 [2] : vector<1x8x8xf32> to vector<1x8xf32>
    %25 = vector.shape_cast %24 : vector<1x8xf32> to vector<1x8x1xf32>
    %26 = tpu.reciprocal %25 {approx = true} : vector<1x8x1xf32> -> vector<1x8x1xf32>
    %27 = vector.broadcast %26 : vector<1x8x1xf32> to vector<1x8x8xf32>
    %28 = arith.mulf %23, %27 : vector<1x8x8xf32>
    %29 = arith.truncf %28 : vector<1x8x8xf32> to vector<1x8x8xbf16>
    %cst_8 = arith.constant dense<0.000000e+00> : vector<1x8x32xf32>
    %30 = tpu.matmul %29, %11, %cst_8 {dimension_numbers = #tpu.dot_dimension_numbers<[2], [1], [1], [2], [0, 0, 0, 1, 1, 2], [0], [0]>} : vector<1x8x8xbf16>, vector<1x8x32xbf16>, vector<1x8x32xf32> -> vector<1x8x32xf32>
    %c0_9 = arith.constant 0 : index
    %c0_10 = arith.constant 0 : index
    %c0_11 = arith.constant 0 : index
    %31 = vector.load %arg3[%c0_9, %c0_10, %c0_11] : memref<1x8x32xf32, #tpu.memory_space<vmem>>, vector<1x8x32xf32>
    tpu.vector_store %arg3[%c0_9, %c0_10, %c0_11], %30 {strides = array<i32>} : memref<1x8x32xf32, #tpu.memory_space<vmem>>, vector<1x8x32xf32>,
    return
  }
  func.func @transform_0(%arg0: i32) -> (i32, i32, i32) {
    %c0_i32 = arith.constant 0 : i32
    %c0_i32_0 = arith.constant 0 : i32
    %c0_i32_1 = arith.constant 0 : i32
    return %arg0, %c0_i32, %c0_i32_0 : i32, i32, i32
  }
  func.func @transform_1(%arg0: i32) -> (i32, i32) {
    %c0_i32 = arith.constant 0 : i32
    %c0_i32_0 = arith.constant 0 : i32
    %c0_i32_1 = arith.constant 0 : i32
    return %c0_i32, %c0_i32_0 : i32, i32
  }
  func.func @transform_2(%arg0: i32) -> (i32, i32, i32) {
    %c0_i32 = arith.constant 0 : i32
    %c0_i32_0 = arith.constant 0 : i32
    %c0_i32_1 = arith.constant 0 : i32
    return %arg0, %c0_i32, %c0_i32_0 : i32, i32, i32
  }
}

</mosaic_0001>

<bundles_post_ra>
// kernel: self_attention.1
= control target key start
LH: loop header
LB: loop body
LE: loop exit
PB: predicated region body
PF: predicated region fallthrough
CT: control target
= control target key end

     0   :  { %7 = vsyncpa [#allocation3], 0  ;;  %s945_s0 = inlined_call_operand.vmem [shape: f32[2,8,384], index: 0, kind: input, shape index: {}]   ;;  %s946_s1 = inlined_call_operand.vmem [shape: bf16[384,96], index: 1, kind: input, shape index: {}]   ;;  %s947_s2 = inlined_call_operand.hbm [shape: f32[2,8,32], index: 2, kind: output, shape index: {}]  }
   0x1   :  { %9 = vsyncpa [#allocation3 + $0x1], 0  ;;  %s782_s9 = smov 0   ;;  %s784_s10 = smov 0  }
   0x2   :  { %s786_s11 = smov 0   ;;  %s788_s12 = smov 0  }
   0x3 LB: > { %s803_s13 = sadd.s32 4294967295, %s763_s12   ;;  %s523_s14 = sadd.s32 4294967294, %s763_s12   ;;  %s763_s12 = sphi %s788_s12, %s953_s12   ;;  %s759_s11 = sphi %s786_s11, %s952_s11   ;;  %s755_s10 = sphi %s784_s10, %s951_s10   ;;  %s751_s9 = sphi %s782_s9, %s950_s9  }
   0x4   : > { %s807_s15 = sadd.s32 1, %s763_s12   ;;  %s69_s16 = sadd.s32 1, %s759_s11 }
   0x5   : > { %s66_s17 = ssub.s32 %s763_s12, %s807_s15  ;;  %p79_p0 = scmp.ne.s32.totalorder %s759_s11, %s755_s10 }
   0x6   : > { %p67_p1 = scmp.eq.s32.totalorder %s66_s17, 0  ;;  %p80_p2 = scmp.eq.s32.totalorder %s803_s13, 1 }
   0x7   : > { %p85_p3 = scmp.ne.s32.totalorder %s755_s10, %s751_s9  ;;  %p86_p4 = scmp.eq.s32.totalorder %s523_s14, 1 }
   0x8   : > { %s818_s18 = scalar_select %p67_p1, %s759_s11, %s69_s16  }
   0x9   : > { %p820_p5 = por %p80_p2, %p79_p0  ;;  %p824_p6 = por %p86_p4, %p85_p3 }
   0xa   : > { %p526_p7 = scmp.ge.s32.totalorder %s763_s12, 1  ;;  %p115_p8 = scmp.lt.s32.totalorder %s763_s12, 3 }
   0xc   : > { %p116_p9 = pnand %p526_p7, %p115_p8 }
   0xd   : > { %p137_p10 = scmp.lt.s32.totalorder (!%p116_p9), %s803_s13, 1  ;;  %s765_s8 = smov (!%p116_p9), 96  }
   0xe   : > { %119 = sbr.rel (%p116_p9) target bundleno = 862 (0x35e), region = 28  ;;  %s766_s14 = smov (!%p116_p9), 64  }
   0xf   : > { %s134_s16 = sand.u32 (!%p116_p9), 1, %s755_s10  }
  0x10   : > { %s527_s21 = sshll.u32 (!%p116_p9), %s134_s16, 3  ;;  %s449_s28 = scalar_lea.sflag (!%p116_p9), [#allocation3], %s134_s16 }
  0x11   : > { %s136_s25 = scalar_lea.vmem (!%p116_p9), [#allocation2], %s527_s21 }
  0x12   : > { %s461_s26 = sshll.u32 (!%p116_p9), %s136_s25, 4  ;;  %s462_s26 = int_to_ptr.vmem [resolvable:$true] %s461_s26 }
  0x13   : > { %v638_v0 = vld [vmem:[%s946_s1 + $0x38] sm:$0xff]  ;;  %v637_v3 = vld [vmem:[%s946_s1 + $0x30] sm:$0xff]  ;;  %v636_v6 = vld [vmem:[%s946_s1 + $0x28] sm:$0xff]  ;;  %s138_s4 = scalar_select %p137_p10, %s803_s13, 1  ;;  %vm386_vm0 = vcmask 261120   ;;  %v406_v43 = vlaneseq  ;;  %vm412_vm2 = vcmask 64512  }
  0x14   : > { %v646_v1 = vld [vmem:[%s946_s1 + $0x78] sm:$0xff]  ;;  %341 = vmatpush.bf16.msra.mxu0 %v638_v0  ;;  %v645_v4 = vld [vmem:[%s946_s1 + $0x70] sm:$0xff]  ;;  %v644_v7 = vld [vmem:[%s946_s1 + $0x68] sm:$0xff]  ;;  %vm430_vm3 = vcmask 1043456  }
  0x15   : > { %v654_v2 = vld [vmem:[%s946_s1 + $0xb8] sm:$0xff]  ;;  %354 = vmatpush.bf16.msra.mxu1 %v646_v1  ;;  %v653_v5 = vld [vmem:[%s946_s1 + $0xb0] sm:$0xff]  ;;  %v652_v8 = vld [vmem:[%s946_s1 + $0xa8] sm:$0xff]  ;;  %s655_s17 = smul.u32 24, %s138_s4  ;;  %v407_v44 = vshrl.u32 %v406_v43, 7  ;;  %v409_v45 = vand.u32 127, %v406_v43 }
  0x16   : > { %367 = vmatpush.bf16.msra.mxu2 %v654_v2  ;;  %v635_v9 = vld [vmem:[%s946_s1 + $0x20] sm:$0xff]  ;;  %v634_v12 = vld [vmem:[%s946_s1 + $0x18] sm:$0xff]  ;;  %v633_v15 = vld [vmem:[%s946_s1 + $0x10] sm:$0xff]  ;;  %s721_s4 = scalar_lea.hbm %s947_s2, 16 }
  0x17   : > { %v643_v10 = vld [vmem:[%s946_s1 + $0x60] sm:$0xff]  ;;  %v642_v13 = vld [vmem:[%s946_s1 + $0x58] sm:$0xff]  ;;  %v641_v16 = vld [vmem:[%s946_s1 + $0x50] sm:$0xff]  ;;  %s141_s29 = scalar_lea.vmem %s945_s0, %s655_s17  ;;  %vm410_vm1 = vcmp.le.s32.totalorder %v409_v45, %v407_v44  ;;  %s628_s17 = sshll.u32 %s803_s13, 3 }
  0x18   : > { %342 = vmatpush.bf16.msra.mxu0 %v637_v3  ;;  %v651_v11 = vld [vmem:[%s946_s1 + $0xa0] sm:$0xff]  ;;  %v650_v14 = vld [vmem:[%s946_s1 + $0x98] sm:$0xff]  ;;  %v649_v17 = vld [vmem:[%s946_s1 + $0x90] sm:$0xff]  ;;  %s459_s24 = scalar_lea.hbm %s947_s2, %s628_s17 }
  0x19   : > { %355 = vmatpush.bf16.msra.mxu1 %v645_v4  ;;  %v632_v18 = vld [vmem:[%s946_s1 + $0x8] sm:$0xff]  ;;  %v631_v21 = vld [vmem:[%s946_s1] sm:$0xff]  ;;  %v145_v26 = vld [vmem:[%s141_s29 + $0x10] sm:$0xff]  ;;  %s463_s27 = sshll.u32 %s459_s24, 4  ;;  %s464_s27 = int_to_ptr.hbm [resolvable:$true] %s463_s27 }
  0x1a   : > { %368 = vmatpush.bf16.msra.mxu2 %v653_v5  ;;  %v640_v19 = vld [vmem:[%s946_s1 + $0x48] sm:$0xff]  ;;  %v639_v22 = vld [vmem:[%s946_s1 + $0x40] sm:$0xff]  ;;  %v148_v29 = vpack.c.bf16 %v145_v26, %v145_v26 }
  0x1b   : > { %v648_v20 = vld [vmem:[%s946_s1 + $0x88] sm:$0xff]  ;;  %v143_v23 = vld [vmem:[%s141_s29] sm:$0xff] }
  0x1c   : > { %343 = vmatpush.bf16.msra.mxu0 %v636_v6  ;;  %v144_v24 = vld [vmem:[%s141_s29 + $0x8] sm:$0xff]  ;;  %v647_v25 = vld [vmem:[%s946_s1 + $0x80] sm:$0xff]  ;;  %v146_v27 = vpack.c.bf16 %v143_v23, %v143_v23  ;;  %s715_s29 = sshra.s32 %s464_s27, 4  ;;  %s716_s29 = int_to_ptr.hbm [resolvable:$true] %s715_s29 }
  0x1d   : > { %356 = vmatpush.bf16.msra.mxu1 %v644_v7  ;;  %v147_v28 = vpack.c.bf16 %v144_v24, %v144_v24  ;;  %s717_s30 = scalar_lea.hbm %s716_s29, 8  ;;  %p722_p0 = scmp.lt.s32.totalorder %s716_s29, %s947_s2 }
  0x1e   : > { %369 = vmatpush.bf16.msra.mxu2 %v652_v8  ;;  %p718_p11 = scmp.ne.s32.totalorder %s716_s29, %s717_s30  ;;  %p723_p1 = scmp.lt.s32.totalorder %s721_s4, %s717_s30 }
  0x20   : > { %344 = vmatpush.bf16.msra.mxu0 %v635_v9  ;;  %p719_p12 = pnand %p718_p11, %p820_p5  ;;  %p724_p2 = por %p723_p1, %p722_p0 }
  0x21   : > { %357 = vmatpush.bf16.msra.mxu1 %v643_v10 }
  0x22   : > { %370 = vmatpush.bf16.msra.mxu2 %v651_v11  ;;  %p720_p13 = pneg %p719_p12 }
  0x24   : > { %345 = vmatpush.bf16.msra.mxu0 %v634_v12  ;;  %p725_p3 = pnand %p724_p2, %p720_p13 }
  0x25   : > { %358 = vmatpush.bf16.msra.mxu1 %v642_v13 }
  0x26   : > { %371 = vmatpush.bf16.msra.mxu2 %v650_v14 }
  0x28   : > { %346 = vmatpush.bf16.msra.mxu0 %v633_v15 }
  0x29   : > { %359 = vmatpush.bf16.msra.mxu1 %v641_v16 }
  0x2a   : > { %372 = vmatpush.bf16.msra.mxu2 %v649_v17 }
  0x2c   : > { %347 = vmatpush.bf16.msra.mxu0 %v632_v18 }
  0x2d   : > { %360 = vmatpush.bf16.msra.mxu1 %v640_v19 }
  0x2e   : > { %373 = vmatpush.bf16.msra.mxu2 %v648_v20 }
  0x30   : > { %348 = vmatpush.bf16.msra.mxu0 %v631_v21 }
  0x31   : > { %361 = vmatpush.bf16.msra.mxu1 %v639_v22 }
  0x32   : > { %374 = vmatpush.bf16.msra.mxu2 %v647_v25 }
  0x33   : > { %349 = vmatmul.bf16.vlgmr.msra.gmra.mxu0 %v146_v27 }
  0x34   : > { %362 = vmatmul.bf16.vlgmr.msra.gmra.mxu1 %v147_v28 }
  0x35   : > { %375 = vmatmul.bf16.vlgmr.msra.gmra.mxu2 %v148_v29 }
  0xb0   : > { %v350_v30 = vpop.f32.mrf.mxu0 }
  0xb1   : > { %v363_v31 = vpop.f32.mrf.mxu1 }
  0xb2   : > { %v364_v32 = vadd.f32 %v363_v31, %v350_v30 }
  0xb8   : > { %v376_v33 = vpop.f32.mrf.mxu2  ;;  %v352_v35 = vpop.f32.mrf.mxu0 }
  0xb9   : > { %v377_v34 = vadd.f32 %v376_v33, %v364_v32  ;;  %v365_v36 = vpop.f32.mrf.mxu1 }
  0xbb   : > { %v380_v37 = vpack.c.bf16 %v377_v34, %v377_v34 }
  0xbd   : > { %v382_v38 = vunpack.c.l.b16 %v380_v37 }
  0xbf   : > { %v383_v39 = vpack.c.b16 %v382_v38, %v382_v38 }
  0xc0   : > { %v378_v40 = vpop.f32.mrf.mxu2 }
  0xc1   : > { %384 = vrot.lane.b32.xlu0 %v383_v39, %s765_s8 }
 0x133   : > { %v385_v41 = vpop.permute.xlu0 %384 }
 0x134   : > { %v391_v42 = vsel %vm386_vm0, %v385_v41, 0 }
 0x135   : > { %400 = vmatpush.bf16.xpose.msra.mxu3 %v391_v42 }
 0x13c   : > { %625 = vmatmul.msk.bf16.vlgmr.msra.gmra.mxu3 %vm386_vm0, %v380_v37 }
 0x1bf   : > { %v402_v46 = vpop.f32.mrf.mxu3 }
 0x1c0   : > { %v411_v47 = vsel %vm410_vm1, %v402_v46, -1e+30 }
 0x1c1   : > { %v413_v48 = vsel %vm412_vm2, %v411_v47, -inf }
 0x1c2   : > { %414 = vmax.xlane.f32.xlu0 %v413_v48 }
 0x1c7   : > { %v404_v49 = vpop.f32.mrf.mxu3 }
 0x235   : > { %v415_v50 = vpop.xlane.xlu0 %414 }
 0x236   : > { %v416_v51 = vsub.f32 %v411_v47, %v415_v50 }
 0x238   : > { %v417_v52 = vmul.f32 1.442695, %v416_v51 }
 0x23a   : > { %697 = vpow2.f32 %v417_v52 }
 0x240   : > { %v698_v53 = vpop.eup %697 }
 0x241   : > { %v419_v54 = vsel %vm412_vm2, %v698_v53, 0.0 }
 0x242   : > { %420 = vadd.xlane.f32.xlu1 %v419_v54 }
 0x25b   : > { %425 = vrot.lane.b32.xlu1 %v383_v39, %s766_s14 }
 0x2b5   : > { %v421_v55 = vpop.xlane.xlu1 %420 }
 0x2b6   : > { %699 = vrcp.f32 %v421_v55 }
 0x2bc   : > { %v700_v56 = vpop.eup %699 }
 0x2bd   : > { %v423_v57 = vmul.f32 %v700_v56, %v698_v53 }
 0x2bf   : > { %v424_v60 = vpack.c.bf16 %v423_v57, %v423_v57 }
 0x2cd   : > { %v426_v58 = vpop.permute.xlu1 %425 }
 0x2ce   : > { %v432_v59 = vsel %vm430_vm3, %v426_v58, 0 }
 0x2cf   : > { %441 = vmatpush.bf16.msrb.mxu3 %v432_v59 }
 0x2d2   : > { %626 = vmatmul.msk.bf16.vlgmr.msrb.gmra.mxu3 %vm412_vm2, %v424_v60 }
 0x355   : > { %v443_v61 = vpop.f32.mrf.mxu3 }
 0x356   : > { %447 = vst.msk [vmem:[%s136_s25] sm:$0xff] %vm386_vm0, %v443_v61 }
 0x357   : > { %728 = shalt.err (!%p725_p3)
}
 0x358   : > { %656 = dma.vmem_to_hbm [thread:$0]  (%p820_p5), %s462_s26, 128, %s464_s27, %s449_s28  }
 0x35d   : > { %v445_v62 = vpop.f32.mrf.mxu3 }
 0x35e PF: > { %p662_p4 = scmp.ge.s32.totalorder %s763_s12, 2  ;;  %s475_s7 = sand.u32 1, %s751_s9  }
 0x35f   : > { %s476_s8 = scalar_lea.sflag [#allocation3], %s475_s7 }
 0x360   : > { %p659_p7 = pnand %p662_p4, %p824_p6 }
 0x362   : > { %p660_p8 = pneg %p659_p7 }
 0x364   : > { %746 = dma.done.wait (%p660_p8), %s476_s8, 128  }
 0x365   : > { %748 = vsyncadd (%p660_p8), %s476_s8, 4294967168  ;;  %p12_p9 = scmp.ge.s32.totalorder %s807_s15, 4   ;;  %s950_s9 = smov %s755_s10 }
 0x366   : > { %s951_s10 = smov %s759_s11  ;;  %s952_s11 = smov %s818_s18 }
 0x367   : > { %s953_s12 = smov %s807_s15  ;;  %14 = sbr.rel (!%p12_p9) target bundleno = 3 (0x3), region = 63 }
 0x36c   :  { %482 = vsyncpa [#allocation3], 1 }
 0x36d   :  { %484 = vsyncpa [#allocation3 + $0x1], 1 }

</bundles_post_ra>
